<compile_context>
chip_gen: v5e
topology: v5e:2x2
jax: 0.10.0
libtpu: 0.0.40
codegen_flags: <defaults>
</compile_context>

<pallas_src>
import functools

import jax
import jax.numpy as jnp
from jax import lax
from jax.experimental import pallas as pl
from jax.experimental.pallas import tpu as pltpu

_F32 = jnp.float32
_BF16 = jnp.bfloat16
_LANE = 128          # lane-dense padded hidden width
_VMEM_LIMIT = 32 * 1024 * 1024


# ----------------------------- helpers ------------------------------------- #

def _silu(v):
    return v * jax.nn.sigmoid(v)


def _round_up(v, m):
    return ((v + m - 1) // m) * m


def _pad2(a, r, c):
    return jnp.pad(a, ((0, r - a.shape[0]), (0, c - a.shape[1])))


# ----------------------------- kernels ------------------------------------- #

def dist_kernel(x_ref, gsrc_ref, gdst_ref, d2_ref):
    """Layer-invariant squared edge distances d2 = ||x_src - x_dst||^2 (computed once)."""
    xs = jnp.dot(gsrc_ref[...], x_ref[...], preferred_element_type=_F32)
    xd = jnp.dot(gdst_ref[...], x_ref[...], preferred_element_type=_F32)
    d2_ref[...] = jnp.sum((xs - xd) ** 2, axis=-1, keepdims=True)


def fused_egnn_kernel(feat0_ref, inw_ref, inb_ref,
                      gsrc_ref, gdst_ref, gdt_ref, d2_ref,
                      w1s_ref, w1d_ref, w1x_ref, b1_ref, w2_ref, b2_ref,
                      we_ref, be_ref, u1_ref, c1_ref, u2_ref, c2_ref,
                      v1_ref, vb1_ref, v2_ref, vb2_ref,
                      out_ref, feat_s, msum_s):
    """Input MLP + depth x EGCLayer + node-wise output MLP, feat resident in VMEM scratch.

    grid = (layer, edge_tile); both axes carry state (feat across layers, msum across edge
    tiles) so they are 'arbitrary'.  On multi-TensorCore chips, shard independent graphs
    instead of these axes.
    """
    l = pl.program_id(0)
    e = pl.program_id(1)
    n_l = pl.num_programs(0)
    n_e = pl.num_programs(1)

    # input MLP: feat = SiLU(Linear(node_feat)) -- only at the very first grid step.
    @pl.when(jnp.logical_and(l == 0, e == 0))
    def _():
        feat_s[...] = _silu(
            jnp.dot(feat0_ref[...], inw_ref[...], preferred_element_type=_F32)
            + inb_ref[...])

    # reset the per-layer message accumulator at the first edge tile of each layer.
    @pl.when(e == 0)
    def _():
        msum_s[...] = jnp.zeros_like(msum_s)

    feat = feat_s[...]                                    # (N, HP) f32, VMEM-resident
    feat_bf = feat.astype(_BF16)

    # per-edge gathers (edges.src / edges.dst) as bf16 one-hot matmuls, f32 accumulation.
    fs = jnp.dot(gsrc_ref[...], feat_bf, preferred_element_type=_F32)     # (TE, HP)
    fd = jnp.dot(gdst_ref[...], feat_bf, preferred_element_type=_F32)     # (TE, HP)

    # message_network: Linear(2H+1 -> H)+SiLU, Linear(H -> H)+SiLU.  First linear split
    # row-wise [W_src; W_dst; W_dist] to avoid a concat.
    h = (jnp.dot(fs, w1s_ref[0], preferred_element_type=_F32)
         + jnp.dot(fd, w1d_ref[0], preferred_element_type=_F32)
         + d2_ref[...] * w1x_ref[0] + b1_ref[0])
    h = _silu(h)
    m = _silu(jnp.dot(h, w2_ref[0], preferred_element_type=_F32) + b2_ref[0])

    # soft_edge_network: sigmoid(Linear(H -> 1)) gate.
    ew = jax.nn.sigmoid(jnp.sum(m * we_ref[0], axis=-1, keepdims=True) + be_ref[0])
    m = m * ew

    # scatter-sum of gated messages to destination nodes via pre-transposed gdst^T
    # (no in-kernel XLU transpose); accumulated over edge tiles.
    msum_s[...] += jnp.dot(gdt_ref[...], m.astype(_BF16),
                           preferred_element_type=_F32)

    last_e = e == n_e - 1

    # update_network on (m_sum + feat) + residual, once all edge tiles are reduced.
    @pl.when(last_e)
    def _():
        inp = msum_s[...] + feat
        u = _silu(jnp.dot(inp, u1_ref[0], preferred_element_type=_F32) + c1_ref[0])
        feat_s[...] = (jnp.dot(u, u2_ref[0], preferred_element_type=_F32)
                       + c2_ref[0] + feat)

    # node_wise_output_network (Linear -> SiLU -> Linear) after the last layer.
    @pl.when(jnp.logical_and(last_e, l == n_l - 1))
    def _():
        f = feat_s[...]
        hh = _silu(jnp.dot(f, v1_ref[...], preferred_element_type=_F32) + vb1_ref[...])
        out_ref[...] = (jnp.dot(hh, v2_ref[...], preferred_element_type=_F32)
                        + vb2_ref[...])


def readout_kernel(feat_ref, mem_ref, invc_ref,
                   o1s_ref, o1m_ref, o1x_ref, e1_ref,
                   gamma_ref, beta_ref, mean_ref, var_ref,
                   o2_ref, e2_ref, out_ref):
    """Graph readouts [sum, mean, max] + output MLP (Linear -> BN(eval) -> ReLU -> Linear)."""
    feat = feat_ref[...]                                   # (N, HP)
    mem = mem_ref[...]                                     # (B, N)

    s = jnp.dot(mem, feat, preferred_element_type=_F32)    # sum readout   (B, HP)
    mn = s * invc_ref[...]                                 # mean readout  (B, HP)
    # max readout with a single fused broadcast: members add 0, non-members add -1e30.
    mx = jnp.max(feat[None, :, :] + (mem[:, :, None] - 1.0) * 1e30, axis=1)

    # output MLP first linear (3H -> Hr), split row-wise along [sum, mean, max].
    h = (jnp.dot(s, o1s_ref[...], preferred_element_type=_F32)
         + jnp.dot(mn, o1m_ref[...], preferred_element_type=_F32)
         + jnp.dot(mx, o1x_ref[...], preferred_element_type=_F32)
         + e1_ref[...])
    # BatchNorm1d, inference mode with default running stats.
    h = (h - mean_ref[...]) * lax.rsqrt(var_ref[...] + 1e-5) * gamma_ref[...] + beta_ref[...]
    h = jnp.maximum(h, 0.0)                                # MLP default mid_activation = ReLU
    out_ref[...] = jnp.dot(h, o2_ref[...], preferred_element_type=_F32) + e2_ref[...]


# --------------------------- parameters ------------------------------------ #

def init_params(key, node_dim, hidden_dim, target_dim, depth):
    keys = iter(jax.random.split(key, 64))

    def lin(fan_in, fan_out):
        k1, k2 = jax.random.split(next(keys))
        bound = 1.0 / float(fan_in) ** 0.5
        w = jax.random.uniform(k1, (fan_in, fan_out), _F32, -bound, bound)
        b = jax.random.uniform(k2, (1, fan_out), _F32, -bound, bound)
        return w, b

    H = hidden_dim
    p = {}
    p['in_w'], p['in_b'] = lin(node_dim, H)                  # input MLP (layers=1)

    layers = []
    for _ in range(depth):
        W1, b1 = lin(2 * H + 1, H)                           # message net layer 1
        W2, b2 = lin(H, H)                                   # message net layer 2
        We, be = lin(H, 1)                                   # soft edge net
        U1, c1 = lin(H, H)                                   # update net layer 1
        U2, c2 = lin(H, H)                                   # update net layer 2
        layers.append(dict(
            w1s=W1[:H], w1d=W1[H:2 * H], w1x=W1[2 * H:],     # (H,H), (H,H), (1,H)
            b1=b1, w2=W2, b2=b2,
            we=We.T, be=be,                                  # (1,H), (1,1)
            u1=U1, c1=c1, u2=U2, c2=c2))
    p['layers'] = layers

    p['v1'], p['vb1'] = lin(H, H)                            # node-wise output net
    p['v2'], p['vb2'] = lin(H, H)

    O1, e1 = lin(3 * H, H)                                   # readout MLP layer 1
    p['o1s'], p['o1m'], p['o1x'] = O1[:H], O1[H:2 * H], O1[2 * H:]
    p['e1'] = e1
    p['bn_gamma'] = jnp.ones((1, H), _F32)
    p['bn_beta'] = jnp.zeros((1, H), _F32)
    p['bn_mean'] = jnp.zeros((1, H), _F32)
    p['bn_var'] = jnp.ones((1, H), _F32)
    p['o2'], p['e2'] = lin(H, target_dim)                    # readout MLP layer 2
    return p


def pack_params(p, hp=_LANE):
    """Zero-pad hidden dims to lane-dense width `hp` (exact) and stack per-layer weights."""
    q = {}
    q['in_w'] = _pad2(p['in_w'], p['in_w'].shape[0], hp)
    q['in_b'] = _pad2(p['in_b'], 1, hp)

    def stack(key, r, c):
        return jnp.stack([_pad2(lp[key], r, c) for lp in p['layers']])

    q['w1s'] = stack('w1s', hp, hp)
    q['w1d'] = stack('w1d', hp, hp)
    q['w1x'] = stack('w1x', 1, hp)
    q['b1'] = stack('b1', 1, hp)
    q['w2'] = stack('w2', hp, hp)
    q['b2'] = stack('b2', 1, hp)
    q['we'] = stack('we', 1, hp)
    q['be'] = jnp.stack([lp['be'] for lp in p['layers']])    # (D, 1, 1)
    q['u1'] = stack('u1', hp, hp)
    q['c1'] = stack('c1', 1, hp)
    q['u2'] = stack('u2', hp, hp)
    q['c2'] = stack('c2', 1, hp)

    q['v1'] = _pad2(p['v1'], hp, hp)
    q['vb1'] = _pad2(p['vb1'], 1, hp)
    q['v2'] = _pad2(p['v2'], hp, hp)
    q['vb2'] = _pad2(p['vb2'], 1, hp)

    q['o1s'] = _pad2(p['o1s'], hp, hp)
    q['o1m'] = _pad2(p['o1m'], hp, hp)
    q['o1x'] = _pad2(p['o1x'], hp, hp)
    q['e1'] = _pad2(p['e1'], 1, hp)
    q['bn_gamma'] = _pad2(p['bn_gamma'], 1, hp)
    q['bn_beta'] = _pad2(p['bn_beta'], 1, hp)
    q['bn_mean'] = _pad2(p['bn_mean'], 1, hp)
    q['bn_var'] = jnp.pad(p['bn_var'], ((0, 0), (0, hp - p['bn_var'].shape[1])),
                          constant_values=1.0)
    q['o2'] = _pad2(p['o2'], hp, p['o2'].shape[1])
    q['e2'] = p['e2']
    return q


# ----------------------------- forward ------------------------------------- #

def egnn_forward(pk, feat0, x, gsrc, gdst, member, inv_count, *, edge_tile=None):
    N, node_dim = feat0.shape
    E = gsrc.shape[0]
    D = pk['w1s'].shape[0]
    HP = pk['in_w'].shape[1]
    T = pk['o2'].shape[1]
    B = member.shape[0]

    # Pad the edge dim so edge tiles are lane-dense (needed for the (N, TE) gdst^T blocks);
    # padded zero one-hot rows contribute nothing to the message sum.
    EP = _round_up(E, _LANE)
    if edge_tile is None:
        # TODO(synk): halve this budget-derived tile for v7x (64 MiB VMEM vs 128 MiB v5e/v6e).
        edge_tile = 512 if EP % 512 == 0 else (256 if EP % 256 == 0 else _LANE)
    TE = edge_tile
    n_et = EP // TE

    gsrc_p = jnp.pad(gsrc, ((0, EP - E), (0, 0)))
    gdst_p = jnp.pad(gdst, ((0, EP - E), (0, 0)))

    # --- layer-invariant squared distances, computed once (edge-tiled, parallel grid) --- #
    d2 = pl.pallas_call(
        dist_kernel,
        grid=(n_et,),
        in_specs=[pl.BlockSpec((N, x.shape[1]), lambda e: (0, 0)),
                  pl.BlockSpec((TE, N), lambda e: (e, 0)),
                  pl.BlockSpec((TE, N), lambda e: (e, 0))],
        out_specs=pl.BlockSpec((TE, 1), lambda e: (e, 0)),
        out_shape=jax.ShapeDtypeStruct((EP, 1), _F32),
        compiler_params=pltpu.CompilerParams(
            dimension_semantics=("parallel",),
            vmem_limit_bytes=_VMEM_LIMIT),
    )(x, gsrc_p, gdst_p)

    # bf16 one-hot matrices (exact) + pre-transposed scatter matrix (layout plumbing).
    gsrc_bf = gsrc_p.astype(_BF16)
    gdst_bf = gdst_p.astype(_BF16)
    gdt_bf = gdst_bf.T                                       # (N, EP)

    const2 = lambda l, e: (0, 0)
    layer3 = lambda l, e: (l, 0, 0)
    edge_row = lambda l, e: (e, 0)

    in_specs = [
        pl.BlockSpec((N, node_dim), const2),                 # feat0
        pl.BlockSpec((node_dim, HP), const2),                # in_w
        pl.BlockSpec((1, HP), const2),                       # in_b
        pl.BlockSpec((TE, N), edge_row),                     # gsrc  (bf16)
        pl.BlockSpec((TE, N), edge_row),                     # gdst  (bf16)
        pl.BlockSpec((N, TE), lambda l, e: (0, e)),          # gdst^T (bf16)
        pl.BlockSpec((TE, 1), edge_row),                     # d2
        pl.BlockSpec((1, HP, HP), layer3),                   # w1s
        pl.BlockSpec((1, HP, HP), layer3),                   # w1d
        pl.BlockSpec((1, 1, HP), layer3),                    # w1x
        pl.BlockSpec((1, 1, HP), layer3),                    # b1
        pl.BlockSpec((1, HP, HP), layer3),                   # w2
        pl.BlockSpec((1, 1, HP), layer3),                    # b2
        pl.BlockSpec((1, 1, HP), layer3),                    # we
        pl.BlockSpec((1, 1, 1), layer3),                     # be
        pl.BlockSpec((1, HP, HP), layer3),                   # u1
        pl.BlockSpec((1, 1, HP), layer3),                    # c1
        pl.BlockSpec((1, HP, HP), layer3),                   # u2
        pl.BlockSpec((1, 1, HP), layer3),                    # c2
        pl.BlockSpec((HP, HP), const2),                      # v1
        pl.BlockSpec((1, HP), const2),                       # vb1
        pl.BlockSpec((HP, HP), const2),                      # v2
        pl.BlockSpec((1, HP), const2),                       # vb2
    ]

    feat = pl.pallas_call(
        fused_egnn_kernel,
        grid=(D, n_et),
        in_specs=in_specs,
        out_specs=pl.BlockSpec((N, HP), const2),
        out_shape=jax.ShapeDtypeStruct((N, HP), _F32),
        scratch_shapes=[pltpu.VMEM((N, HP), _F32),           # feat (carried across layers)
                        pltpu.VMEM((N, HP), _F32)],          # per-layer message sum
        compiler_params=pltpu.CompilerParams(
            dimension_semantics=("arbitrary", "arbitrary"),
            vmem_limit_bytes=_VMEM_LIMIT),
    )(feat0, pk['in_w'], pk['in_b'], gsrc_bf, gdst_bf, gdt_bf, d2,
      pk['w1s'], pk['w1d'], pk['w1x'], pk['b1'], pk['w2'], pk['b2'],
      pk['we'], pk['be'], pk['u1'], pk['c1'], pk['u2'], pk['c2'],
      pk['v1'], pk['vb1'], pk['v2'], pk['vb2'])

    # --- graph readouts [sum, mean, max] + output MLP ----------------------------------- #
    ro_args = (feat, member, inv_count,
               pk['o1s'], pk['o1m'], pk['o1x'], pk['e1'],
               pk['bn_gamma'], pk['bn_beta'], pk['bn_mean'], pk['bn_var'],
               pk['o2'], pk['e2'])
    out = pl.pallas_call(
        readout_kernel,
        grid=(1,),
        in_specs=[pl.BlockSpec(a.shape, lambda i, _nd=len(a.shape): (0,) * _nd)
                  for a in ro_args],
        out_specs=pl.BlockSpec((B, T), lambda i: (0, 0)),
        out_shape=jax.ShapeDtypeStruct((B, T), _F32),
        compiler_params=pltpu.CompilerParams(
            dimension_semantics=("arbitrary",),
            vmem_limit_bytes=_VMEM_LIMIT),
    )(*ro_args)
    return out


# ----------------------------- reference ----------------------------------- #

def egnn_reference(params, feat0, x, gsrc, gdst, member, inv_count):
    """Pure-JAX f32 reference of the same forward (for correctness check)."""
    P = functools.partial(jnp.dot, precision=jax.lax.Precision.HIGHEST)
    feat = _silu(P(feat0, params['in_w']) + params['in_b'])
    for lp in params['layers']:
        fs, fd = P(gsrc, feat), P(gdst, feat)
        xs, xd = P(gsrc, x), P(gdst, x)
        d2 = jnp.sum((xs - xd) ** 2, axis=-1, keepdims=True)
        h = _silu(P(fs, lp['w1s']) + P(fd, lp['w1d']) + d2 * lp['w1x'] + lp['b1'])
        m = _silu(P(h, lp['w2']) + lp['b2'])
        ew = jax.nn.sigmoid(jnp.sum(m * lp['we'], axis=-1, keepdims=True) + lp['be'])
        m = m * ew
        msum = P(gdst.T, m)
        u = _silu(P(msum + feat, lp['u1']) + lp['c1'])
        feat = P(u, lp['u2']) + lp['c2'] + feat
    feat = P(_silu(P(feat, params['v1']) + params['vb1']), params['v2']) + params['vb2']
    s = P(member, feat)
    mn = s * inv_count
    mx = jnp.max(jnp.where(member[:, :, None] > 0.5, feat[None, :, :], -1e30), axis=1)
    h = P(s, params['o1s']) + P(mn, params['o1m']) + P(mx, params['o1x']) + params['e1']
    h = (h - params['bn_mean']) * lax.rsqrt(params['bn_var'] + 1e-5) * params['bn_gamma'] + params['bn_beta']
    h = jnp.maximum(h, 0.0)
    return P(h, params['o2']) + params['e2']


# ------------------------------ main ---------------------------------------- #

if __name__ == "__main__":
    node_dim, hidden_dim, target_dim = 8, 32, 4
    depth = 4                    # propagation_depth
    B, n_per = 2, 8              # 2 graphs, 8 nodes each
    N = B * n_per

    key = jax.random.PRNGKey(0)
    k_feat, k_x, k_par = jax.random.split(key, 3)
    feat0 = jax.random.normal(k_feat, (N, node_dim), _F32)   # node features
    x = jax.random.normal(k_x, (N, 3), _F32)                 # 3D coordinates

    # Fully-connected (no self-loop) edges within each graph.
    srcs, dsts = [], []
    for g in range(B):
        for i in range(n_per):
            for j in range(n_per):
                if i != j:
                    srcs.append(g * n_per + i)
                    dsts.append(g * n_per + j)
    src = jnp.array(srcs, jnp.int32)
    dst = jnp.array(dsts, jnp.int32)
    gsrc = jax.nn.one_hot(src, N, dtype=_F32)                # (E, N)
    gdst = jax.nn.one_hot(dst, N, dtype=_F32)                # (E, N)

    graph_id = jnp.repeat(jnp.arange(B), n_per)
    member = jax.nn.one_hot(graph_id, B, dtype=_F32).T       # (B, N)
    inv_count = 1.0 / member.sum(axis=1, keepdims=True)      # (B, 1)

    params = init_params(k_par, node_dim, hidden_dim, target_dim, depth)
    packed = pack_params(params)

    out = egnn_forward(packed, feat0, x, gsrc, gdst, member, inv_count)
    out = jax.block_until_ready(out)

    ref = egnn_reference(params, feat0, x, gsrc, gdst, member, inv_count)
    assert out.shape == (B, target_dim)
    assert bool(jnp.all(jnp.isfinite(out)))
    # Tolerance accounts for bf16 gather/scatter operands (exact one-hot, bf16-rounded
    # activations, f32 accumulation) vs the f32 HIGHEST-precision reference.
    assert bool(jnp.allclose(out, ref, atol=5e-2, rtol=5e-2)), (out, ref)
    print("KERNEL_OK")
</pallas_src>

<mosaic_0001>
module attributes {stable_mosaic.version = 11 : i64} {
  func.func @dist_kernel(%arg0: i32, %arg1: memref<16x3xf32, #tpu.memory_space<vmem>>, %arg2: memref<128x16xf32, #tpu.memory_space<vmem>>, %arg3: memref<128x16xf32, #tpu.memory_space<vmem>>, %arg4: memref<128x1xf32, #tpu.memory_space<vmem>>) attributes {dimension_semantics = [#tpu.dimension_semantics<parallel>], iteration_bounds = array<i64: 1>, scalar_prefetch = 0 : i64, scratch_operands = 0 : i64, tpu.core_type = #tpu.core_type<tc>, window_params = [{pipeline_mode = #tpu.pipeline_mode<synchronous>, transform_indices = @transform_0, window_bounds = array<i64: 16, 3>}, {transform_indices = @transform_1, window_bounds = array<i64: 128, 16>}, {transform_indices = @transform_2, window_bounds = array<i64: 128, 16>}, {transform_indices = @transform_3, window_bounds = array<i64: 128, 1>}]} {
    %c0 = arith.constant 0 : index
    %c0_0 = arith.constant 0 : index
    %0 = vector.load %arg2[%c0, %c0_0] : memref<128x16xf32, #tpu.memory_space<vmem>>, vector<128x16xf32>
    %c0_1 = arith.constant 0 : index
    %c0_2 = arith.constant 0 : index
    %1 = vector.load %arg1[%c0_1, %c0_2] : memref<16x3xf32, #tpu.memory_space<vmem>>, vector<16x3xf32>
    %cst = arith.constant dense<0.000000e+00> : vector<128x3xf32>
    %2 = tpu.matmul %0, %1, %cst {dimension_numbers = #tpu.dot_dimension_numbers<[1], [0], [0], [1], [0, 0, 1, 1], [], []>} : vector<128x16xf32>, vector<16x3xf32>, vector<128x3xf32> -> vector<128x3xf32>
    %c0_3 = arith.constant 0 : index
    %c0_4 = arith.constant 0 : index
    %3 = vector.load %arg3[%c0_3, %c0_4] : memref<128x16xf32, #tpu.memory_space<vmem>>, vector<128x16xf32>
    %c0_5 = arith.constant 0 : index
    %c0_6 = arith.constant 0 : index
    %4 = vector.load %arg1[%c0_5, %c0_6] : memref<16x3xf32, #tpu.memory_space<vmem>>, vector<16x3xf32>
    %cst_7 = arith.constant dense<0.000000e+00> : vector<128x3xf32>
    %5 = tpu.matmul %3, %4, %cst_7 {dimension_numbers = #tpu.dot_dimension_numbers<[1], [0], [0], [1], [0, 0, 1, 1], [], []>} : vector<128x16xf32>, vector<16x3xf32>, vector<128x3xf32> -> vector<128x3xf32>
    %6 = arith.subf %2, %5 : vector<128x3xf32>
    %7 = arith.mulf %6, %6 : vector<128x3xf32>
    %cst_8 = arith.constant dense<0.000000e+00> : vector<128xf32>
    %8 = vector.multi_reduction <add>, %7, %cst_8 [1] : vector<128x3xf32> to vector<128xf32>
    %9 = vector.shape_cast %8 : vector<128xf32> to vector<128x1xf32>
    %c0_9 = arith.constant 0 : index
    %c0_10 = arith.constant 0 : index
    %10 = vector.load %arg4[%c0_9, %c0_10] : memref<128x1xf32, #tpu.memory_space<vmem>>, vector<128x1xf32>
    tpu.vector_store %arg4[%c0_9, %c0_10], %9 {strides = array<i32>} : memref<128x1xf32, #tpu.memory_space<vmem>>, vector<128x1xf32>,
    return
  }
  func.func @transform_0(%arg0: i32) -> (i32, i32) {
    %c0_i32 = arith.constant 0 : i32
    %c0_i32_0 = arith.constant 0 : i32
    %c0_i32_1 = arith.constant 0 : i32
    return %c0_i32, %c0_i32_0 : i32, i32
  }
  func.func @transform_1(%arg0: i32) -> (i32, i32) {
    %c0_i32 = arith.constant 0 : i32
    %c0_i32_0 = arith.constant 0 : i32
    return %arg0, %c0_i32 : i32, i32
  }
  func.func @transform_2(%arg0: i32) -> (i32, i32) {
    %c0_i32 = arith.constant 0 : i32
    %c0_i32_0 = arith.constant 0 : i32
    return %arg0, %c0_i32 : i32, i32
  }
  func.func @transform_3(%arg0: i32) -> (i32, i32) {
    %c0_i32 = arith.constant 0 : i32
    %c0_i32_0 = arith.constant 0 : i32
    return %arg0, %c0_i32 : i32, i32
  }
}

</mosaic_0001>

<bundles_post_ra>
// kernel: tpu_custom_call.1
= control target key start
LH: loop header
LB: loop body
LE: loop exit
PB: predicated region body
PF: predicated region fallthrough
CT: control target
= control target key end

     0   :  { %vm32_vm0 = vcmask 130048   ;;  %vm307_vm1 = vcmask 23552   ;;  %vm356_vm2 = vcmask 7168   ;;  %s647_s0 = inlined_call_operand.vmem [shape: f32[16,3], index: 0, kind: input, shape index: {}]   ;;  %s648_s1 = inlined_call_operand.vmem [shape: f32[128,16], index: 1, kind: input, shape index: {}]   ;;  %s649_s2 = inlined_call_operand.vmem [shape: f32[128,16], index: 2, kind: input, shape index: {}]   ;;  %s650_s3 = inlined_call_operand.vmem [shape: f32[128,1], index: 3, kind: output, shape index: {}]  }
   0x1   :  { %v31_v0 = vld [vmem:[%s647_s0 + $0x8] sm:$0xff]  ;;  %v30_v1 = vld [vmem:[%s647_s0] sm:$0xff]  ;;  %v16_v10 = vld [vmem:[%s648_s1 + $0x10] sm:$0xff] }
   0x2   :  { %95 = vmatpush.msra.mxu0 %v31_v0  ;;  %409 = vmatpush.msra.mxu2 %v31_v0  ;;  %v14_v2 = vld [vmem:[%s648_s1] sm:$0xff]  ;;  %v15_v6 = vld [vmem:[%s648_s1 + $0x8] sm:$0xff]  ;;  %v24_v11 = vld [vmem:[%s648_s1 + $0x50] sm:$0xff] }
   0x3   :  { %224 = vmatpush.msra.mxu1 %v31_v0  ;;  %411 = vmatpush.msra.mxu3 %v31_v0  ;;  %v22_v3 = vld [vmem:[%s648_s1 + $0x40] sm:$0xff]  ;;  %v23_v7 = vld [vmem:[%s648_s1 + $0x48] sm:$0xff]  ;;  %v148_v12 = vld [vmem:[%s649_s2 + $0x10] sm:$0xff] }
   0x4   :  { %96 = vmatpush.msra.mxu0 %v30_v1  ;;  %410 = vmatpush.msra.mxu2 %v30_v1  ;;  %v146_v4 = vld [vmem:[%s649_s2] sm:$0xff]  ;;  %v147_v8 = vld [vmem:[%s649_s2 + $0x8] sm:$0xff]  ;;  %v156_v13 = vld [vmem:[%s649_s2 + $0x50] sm:$0xff] }
   0x5   :  { %v154_v5 = vld [vmem:[%s649_s2 + $0x40] sm:$0xff]  ;;  %225 = vmatpush.msra.mxu1 %v30_v1  ;;  %412 = vmatpush.msra.mxu3 %v30_v1  ;;  %v155_v9 = vld [vmem:[%s649_s2 + $0x48] sm:$0xff]  ;;  %v17_v14 = vld [vmem:[%s648_s1 + $0x18] sm:$0xff] }
   0x6   :  { %377 = vmatmul.msk.f32.vlgmr.msra.gmra.mxu0 %vm32_vm0, %v14_v2  ;;  %385 = vmatmul.msk.f32.vlgmr.msra.gmra.mxu2 %vm32_vm0, %v22_v3  ;;  %v25_v15 = vld [vmem:[%s648_s1 + $0x58] sm:$0xff]  ;;  %v18_v18 = vld [vmem:[%s648_s1 + $0x20] sm:$0xff]  ;;  %v19_v22 = vld [vmem:[%s648_s1 + $0x28] sm:$0xff] }
   0x7   :  { %393 = vmatmul.msk.f32.vlgmr.msra.gmra.mxu1 %vm32_vm0, %v146_v4  ;;  %401 = vmatmul.msk.f32.vlgmr.msra.gmra.mxu3 %vm32_vm0, %v154_v5  ;;  %v149_v16 = vld [vmem:[%s649_s2 + $0x18] sm:$0xff]  ;;  %v26_v19 = vld [vmem:[%s648_s1 + $0x60] sm:$0xff]  ;;  %v27_v23 = vld [vmem:[%s648_s1 + $0x68] sm:$0xff] }
   0x8   :  { %v157_v17 = vld [vmem:[%s649_s2 + $0x58] sm:$0xff]  ;;  %v150_v20 = vld [vmem:[%s649_s2 + $0x20] sm:$0xff]  ;;  %v151_v24 = vld [vmem:[%s649_s2 + $0x28] sm:$0xff] }
   0x9   :  { %v158_v21 = vld [vmem:[%s649_s2 + $0x60] sm:$0xff]  ;;  %v159_v25 = vld [vmem:[%s649_s2 + $0x68] sm:$0xff]  ;;  %v20_v26 = vld [vmem:[%s648_s1 + $0x30] sm:$0xff] }
   0xa   :  { %v28_v27 = vld [vmem:[%s648_s1 + $0x70] sm:$0xff]  ;;  %v21_v30 = vld [vmem:[%s648_s1 + $0x38] sm:$0xff] }
   0xb   :  { %v152_v28 = vld [vmem:[%s649_s2 + $0x30] sm:$0xff]  ;;  %v29_v31 = vld [vmem:[%s648_s1 + $0x78] sm:$0xff] }
   0xc   :  { %v160_v29 = vld [vmem:[%s649_s2 + $0x70] sm:$0xff]  ;;  %v153_v32 = vld [vmem:[%s649_s2 + $0x38] sm:$0xff] }
   0xd   :  { %v161_v33 = vld [vmem:[%s649_s2 + $0x78] sm:$0xff] }
   0xe   :  { %378 = vmatmul.msk.f32.gmra.mxu0 %vm32_vm0, %v15_v6  ;;  %386 = vmatmul.msk.f32.gmra.mxu2 %vm32_vm0, %v23_v7 }
   0xf   :  { %394 = vmatmul.msk.f32.gmra.mxu1 %vm32_vm0, %v147_v8  ;;  %402 = vmatmul.msk.f32.gmra.mxu3 %vm32_vm0, %v155_v9 }
  0x16   :  { %379 = vmatmul.msk.f32.gmra.mxu0 %vm32_vm0, %v16_v10  ;;  %387 = vmatmul.msk.f32.gmra.mxu2 %vm32_vm0, %v24_v11 }
  0x17   :  { %395 = vmatmul.msk.f32.gmra.mxu1 %vm32_vm0, %v148_v12  ;;  %403 = vmatmul.msk.f32.gmra.mxu3 %vm32_vm0, %v156_v13 }
  0x1e   :  { %380 = vmatmul.msk.f32.gmra.mxu0 %vm32_vm0, %v17_v14  ;;  %388 = vmatmul.msk.f32.gmra.mxu2 %vm32_vm0, %v25_v15 }
  0x1f   :  { %396 = vmatmul.msk.f32.gmra.mxu1 %vm32_vm0, %v149_v16  ;;  %404 = vmatmul.msk.f32.gmra.mxu3 %vm32_vm0, %v157_v17 }
  0x26   :  { %381 = vmatmul.msk.f32.gmra.mxu0 %vm32_vm0, %v18_v18  ;;  %389 = vmatmul.msk.f32.gmra.mxu2 %vm32_vm0, %v26_v19 }
  0x27   :  { %397 = vmatmul.msk.f32.gmra.mxu1 %vm32_vm0, %v150_v20  ;;  %405 = vmatmul.msk.f32.gmra.mxu3 %vm32_vm0, %v158_v21 }
  0x2e   :  { %382 = vmatmul.msk.f32.gmra.mxu0 %vm32_vm0, %v19_v22  ;;  %390 = vmatmul.msk.f32.gmra.mxu2 %vm32_vm0, %v27_v23 }
  0x2f   :  { %398 = vmatmul.msk.f32.gmra.mxu1 %vm32_vm0, %v151_v24  ;;  %406 = vmatmul.msk.f32.gmra.mxu3 %vm32_vm0, %v159_v25 }
  0x36   :  { %383 = vmatmul.msk.f32.gmra.mxu0 %vm32_vm0, %v20_v26  ;;  %391 = vmatmul.msk.f32.gmra.mxu2 %vm32_vm0, %v28_v27 }
  0x37   :  { %399 = vmatmul.msk.f32.gmra.mxu1 %vm32_vm0, %v152_v28  ;;  %407 = vmatmul.msk.f32.gmra.mxu3 %vm32_vm0, %v160_v29 }
  0x3e   :  { %384 = vmatmul.msk.f32.gmra.mxu0 %vm32_vm0, %v21_v30  ;;  %392 = vmatmul.msk.f32.gmra.mxu2 %vm32_vm0, %v29_v31 }
  0x3f   :  { %400 = vmatmul.msk.f32.gmra.mxu1 %vm32_vm0, %v153_v32  ;;  %408 = vmatmul.msk.f32.gmra.mxu3 %vm32_vm0, %v161_v33 }
  0x83   :  { %v98_v34 = vpop.f32.mrf.mxu0 }
  0x84   :  { %v227_v35 = vpop.f32.mrf.mxu1 }
  0x85   :  { %v275_v36 = vsub.f32 %v98_v34, %v227_v35 }
  0x87   :  { %v291_v37 = vmul.f32 %v275_v36, %v275_v36 }
  0x89   :  { %v122_v38 = vpop.f32.mrf.mxu2  ;;  %v308_v39 = vsel %vm307_vm1, %v291_v37, 0.0 }
  0x8a   :  { %v251_v40 = vpop.f32.mrf.mxu3  ;;  %309 = vadd.xlane.f32.xlu0 %v308_v39 }
  0x8b   :  { %v283_v41 = vsub.f32 %v122_v38, %v251_v40  ;;  %v101_v42 = vpop.f32.mrf.mxu0 }
  0x8c   :  { %v230_v43 = vpop.f32.mrf.mxu1 }
  0x8d   :  { %v299_v44 = vmul.f32 %v283_v41, %v283_v41  ;;  %v276_v45 = vsub.f32 %v101_v42, %v230_v43 }
  0x8f   :  { %v292_v46 = vmul.f32 %v276_v45, %v276_v45  ;;  %v332_v47 = vsel %vm307_vm1, %v299_v44, 0.0 }
  0x90   :  { %333 = vadd.xlane.f32.xlu2 %v332_v47 }
  0x91   :  { %v125_v48 = vpop.f32.mrf.mxu2  ;;  %v311_v49 = vsel %vm307_vm1, %v292_v46, 0.0 }
  0x92   :  { %v254_v50 = vpop.f32.mrf.mxu3  ;;  %312 = vadd.xlane.f32.xlu0 %v311_v49 }
  0x93   :  { %v284_v51 = vsub.f32 %v125_v48, %v254_v50  ;;  %v104_v52 = vpop.f32.mrf.mxu0 }
  0x94   :  { %v233_v53 = vpop.f32.mrf.mxu1 }
  0x95   :  { %v300_v54 = vmul.f32 %v284_v51, %v284_v51  ;;  %v277_v55 = vsub.f32 %v104_v52, %v233_v53 }
  0x97   :  { %v293_v56 = vmul.f32 %v277_v55, %v277_v55  ;;  %v335_v57 = vsel %vm307_vm1, %v300_v54, 0.0 }
  0x99   :  { %v128_v58 = vpop.f32.mrf.mxu2  ;;  %v314_v59 = vsel %vm307_vm1, %v293_v56, 0.0 }
  0x9a   :  { %v257_v60 = vpop.f32.mrf.mxu3  ;;  %336 = vadd.xlane.f32.xlu0 %v335_v57  ;;  %315 = vadd.xlane.f32.xlu1 %v314_v59 }
  0x9b   :  { %v285_v61 = vsub.f32 %v128_v58, %v257_v60  ;;  %v107_v62 = vpop.f32.mrf.mxu0 }
  0x9c   :  { %v236_v63 = vpop.f32.mrf.mxu1 }
  0x9d   :  { %v301_v0 = vmul.f32 %v285_v61, %v285_v61  ;;  %v278_v2 = vsub.f32 %v107_v62, %v236_v63 }
  0x9f   :  { %v338_v1 = vsel %vm307_vm1, %v301_v0, 0.0  ;;  %v294_v8 = vmul.f32 %v278_v2, %v278_v2 }
  0xa1   :  { %v131_v3 = vpop.f32.mrf.mxu2  ;;  %v317_v12 = vsel %vm307_vm1, %v294_v8, 0.0 }
  0xa2   :  { %v260_v4 = vpop.f32.mrf.mxu3  ;;  %339 = vadd.xlane.f32.xlu1 %v338_v1 }
  0xa3   :  { %v286_v5 = vsub.f32 %v131_v3, %v260_v4  ;;  %v110_v6 = vpop.f32.mrf.mxu0 }
  0xa4   :  { %v239_v7 = vpop.f32.mrf.mxu1 }
  0xa5   :  { %v302_v9 = vmul.f32 %v286_v5, %v286_v5  ;;  %v279_v10 = vsub.f32 %v110_v6, %v239_v7 }
  0xa7   :  { %v341_v11 = vsel %vm307_vm1, %v302_v9, 0.0  ;;  %v295_v15 = vmul.f32 %v279_v10, %v279_v10 }
  0xa8   :  { %342 = vadd.xlane.f32.xlu2 %v341_v11 }
  0xa9   :  { %v134_v13 = vpop.f32.mrf.mxu2  ;;  %v320_v21 = vsel %vm307_vm1, %v295_v15, 0.0 }
  0xaa   :  { %318 = vadd.xlane.f32.xlu1 %v317_v12  ;;  %v263_v14 = vpop.f32.mrf.mxu3 }
  0xab   :  { %v113_v16 = vpop.f32.mrf.mxu0  ;;  %v287_v17 = vsub.f32 %v134_v13, %v263_v14 }
  0xac   :  { %v242_v18 = vpop.f32.mrf.mxu1 }
  0xad   :  { %v303_v19 = vmul.f32 %v287_v17, %v287_v17  ;;  %v280_v20 = vsub.f32 %v113_v16, %v242_v18 }
  0xaf   :  { %v344_v22 = vsel %vm307_vm1, %v303_v19, 0.0  ;;  %v296_v25 = vmul.f32 %v280_v20, %v280_v20 }
  0xb0   :  { %321 = vadd.xlane.f32.xlu2 %v320_v21  ;;  %345 = vadd.xlane.f32.xlu0 %v344_v22 }
  0xb1   :  { %v137_v23 = vpop.f32.mrf.mxu2  ;;  %v323_v30 = vsel %vm307_vm1, %v296_v25, 0.0 }
  0xb2   :  { %v266_v24 = vpop.f32.mrf.mxu3 }
  0xb3   :  { %v116_v26 = vpop.f32.mrf.mxu0  ;;  %v288_v41 = vsub.f32 %v137_v23, %v266_v24 }
  0xb4   :  { %v245_v27 = vpop.f32.mrf.mxu1 }
  0xb5   :  { %v281_v28 = vsub.f32 %v116_v26, %v245_v27  ;;  %v304_v46 = vmul.f32 %v288_v41, %v288_v41 }
  0xb7   :  { %v297_v29 = vmul.f32 %v281_v28, %v281_v28  ;;  %v347_v49 = vsel %vm307_vm1, %v304_v46, 0.0 }
  0xb8   :  { %324 = vadd.xlane.f32.xlu2 %v323_v30 }
  0xb9   :  { %v326_v31 = vsel %vm307_vm1, %v297_v29, 0.0  ;;  %v140_v32 = vpop.f32.mrf.mxu2 }
  0xba   :  { %327 = vadd.xlane.f32.xlu0 %v326_v31  ;;  %v269_v33 = vpop.f32.mrf.mxu3 }
  0xbb   :  { %v119_v34 = vpop.f32.mrf.mxu0  ;;  %v289_v35 = vsub.f32 %v140_v32, %v269_v33 }
  0xbc   :  { %v248_v36 = vpop.f32.mrf.mxu1 }
  0xbd   :  { %v282_v37 = vsub.f32 %v119_v34, %v248_v36  ;;  %v305_v38 = vmul.f32 %v289_v35, %v289_v35 }
  0xbf   :  { %v298_v39 = vmul.f32 %v282_v37, %v282_v37  ;;  %v350_v40 = vsel %vm307_vm1, %v305_v38, 0.0 }
  0xc0   :  { %351 = vadd.xlane.f32.xlu2 %v350_v40 }
  0xc1   :  { %v329_v42 = vsel %vm307_vm1, %v298_v39, 0.0  ;;  %v143_v43 = vpop.f32.mrf.mxu2 }
  0xc2   :  { %330 = vadd.xlane.f32.xlu1 %v329_v42  ;;  %v272_v44 = vpop.f32.mrf.mxu3 }
  0xc3   :  { %v290_v45 = vsub.f32 %v143_v43, %v272_v44 }
  0xc5   :  { %v306_v47 = vmul.f32 %v290_v45, %v290_v45 }
  0xc7   :  { %v353_v48 = vsel %vm307_vm1, %v306_v47, 0.0 }
  0xc8   :  { %354 = vadd.xlane.f32.xlu0 %v353_v48 }
  0xca   :  { %348 = vadd.xlane.f32.xlu1 %v347_v49 }
  0xfd   :  { %v310_v50 = vpop.xlane.xlu0 %309 }
  0xfe   :  { %357 = vst.msk [vmem:[%s650_s3] sm:$0xff] %vm356_vm2, %v310_v50 }
 0x103   :  { %v334_v51 = vpop.xlane.xlu2 %333 }
 0x104   :  { %365 = vst.msk [vmem:[%s650_s3 + $0x40] sm:$0xff] %vm356_vm2, %v334_v51 }
 0x105   :  { %v313_v52 = vpop.xlane.xlu0 %312 }
 0x106   :  { %358 = vst.msk [vmem:[%s650_s3 + $0x8] sm:$0xff] %vm356_vm2, %v313_v52 }
 0x10d   :  { %v337_v53 = vpop.xlane.xlu0 %336  ;;  %v316_v54 = vpop.xlane.xlu1 %315 }
 0x10e   :  { %366 = vst.msk [vmem:[%s650_s3 + $0x48] sm:$0xff] %vm356_vm2, %v337_v53 }
 0x10f   :  { %359 = vst.msk [vmem:[%s650_s3 + $0x10] sm:$0xff] %vm356_vm2, %v316_v54 }
 0x115   :  { %v340_v55 = vpop.xlane.xlu1 %339 }
 0x116   :  { %367 = vst.msk [vmem:[%s650_s3 + $0x50] sm:$0xff] %vm356_vm2, %v340_v55 }
 0x11b   :  { %v343_v56 = vpop.xlane.xlu2 %342 }
 0x11c   :  { %368 = vst.msk [vmem:[%s650_s3 + $0x58] sm:$0xff] %vm356_vm2, %v343_v56 }
 0x11d   :  { %v319_v57 = vpop.xlane.xlu1 %318 }
 0x11e   :  { %360 = vst.msk [vmem:[%s650_s3 + $0x18] sm:$0xff] %vm356_vm2, %v319_v57 }
 0x123   :  { %v322_v58 = vpop.xlane.xlu2 %321  ;;  %v346_v59 = vpop.xlane.xlu0 %345 }
 0x124   :  { %361 = vst.msk [vmem:[%s650_s3 + $0x20] sm:$0xff] %vm356_vm2, %v322_v58 }
 0x125   :  { %369 = vst.msk [vmem:[%s650_s3 + $0x60] sm:$0xff] %vm356_vm2, %v346_v59 }
 0x12b   :  { %v325_v60 = vpop.xlane.xlu2 %324 }
 0x12c   :  { %362 = vst.msk [vmem:[%s650_s3 + $0x28] sm:$0xff] %vm356_vm2, %v325_v60 }
 0x12d   :  { %v328_v61 = vpop.xlane.xlu0 %327 }
 0x12e   :  { %363 = vst.msk [vmem:[%s650_s3 + $0x30] sm:$0xff] %vm356_vm2, %v328_v61 }
 0x133   :  { %v352_v62 = vpop.xlane.xlu2 %351 }
 0x134   :  { %371 = vst.msk [vmem:[%s650_s3 + $0x70] sm:$0xff] %vm356_vm2, %v352_v62 }
 0x135   :  { %v331_v63 = vpop.xlane.xlu1 %330 }
 0x136   :  { %364 = vst.msk [vmem:[%s650_s3 + $0x38] sm:$0xff] %vm356_vm2, %v331_v63 }
 0x13b   :  { %v355_v0 = vpop.xlane.xlu0 %354 }
 0x13c   :  { %372 = vst.msk [vmem:[%s650_s3 + $0x78] sm:$0xff] %vm356_vm2, %v355_v0 }
 0x13d   :  { %v349_v1 = vpop.xlane.xlu1 %348 }
 0x13e   :  { %370 = vst.msk [vmem:[%s650_s3 + $0x68] sm:$0xff] %vm356_vm2, %v349_v1 }

</bundles_post_ra>
